<compile_context>
chip_gen: v5e
topology: v5e:2x2
jax: 0.10.0
libtpu: 0.0.40
codegen_flags: <defaults>
</compile_context>

<pallas_src>
import functools

import jax
import jax.numpy as jnp
from jax.experimental import pallas as pl
from jax.experimental.pallas import tpu as pltpu


def _pfa_kernel(x_ref, w_ref, b_ref, out_ref, *, hidden):
    # x_ref:   (b, F, p)    -- x2[b, f, p] == x_flat[b, p, f]
    # w_ref:   (F, 2H + F)  -- [Wq | Wk | Wv], stored (in, out)
    # b_ref:   (1, 2H + F)  -- [bq | bk | bv]
    # out_ref: (b, F)
    # Fused QKV projection: contract the F axis of x2 (axis 1) against W's
    # input axis (axis 0). No transpose / concatenate copies, one MXU pass
    # over all b*p "period" rows.
    qkv = jax.lax.dot_general(
        x_ref[...], w_ref[...],
        (((1,), (0,)), ((), ())),
        preferred_element_type=jnp.float32)                     # (b, p, 2H+F)
    qkv = qkv + b_ref[...]                                      # bias broadcast

    q = qkv[:, :, :hidden]                                      # (b, p, H)
    k = qkv[:, :, hidden:2 * hidden]                            # (b, p, H)
    v = qkv[:, :, 2 * hidden:]                                  # (b, p, F)

    # scores[b, pq, pk] = sum_h q[b, pq, h] * k[b, pk, h]  (batched over b,
    # contracting the hidden axis of both operands; no materialized k^T)
    s = jax.lax.dot_general(
        q, k, (((2,), (2,)), ((0,), (0,))),
        preferred_element_type=jnp.float32)                     # (b, p, p)

    # Numerically stable softmax over the last dim.
    s = s - jnp.max(s, axis=-1, keepdims=True)
    e = jnp.exp(s)
    l = jnp.sum(e, axis=-1, keepdims=True)                      # (b, p, 1)
    # EUP approximate reciprocal + one Newton-Raphson step (2 cheap VPU ops)
    # to restore near-f32 accuracy and hold the 1e-5 tolerance.
    r = pl.reciprocal(l, approx=True)
    r = r * (2.0 - l * r)
    attn = e * r                                                # (b, p, p)

    # mean_pq(attn @ v) == mean_pq(attn) @ v  -> batched (1,p)@(p,F) matvec.
    a_mean = jnp.mean(attn, axis=1, keepdims=True)              # (b, 1, p)
    fused_mean = jax.lax.dot_general(
        a_mean, v, (((2,), (1,)), ((0,), (0,))),
        preferred_element_type=jnp.float32)                     # (b, 1, F)

    out_ref[...] = fused_mean[:, 0, :]                          # (b, F)


def pack_params(wq, bq, wk, bk, wv, bv):
    """Done once at parameter-setup time (hoisted off the per-call path)."""
    feat = wq.shape[0]
    hidden = wq.shape[1]
    assert wk.shape == (feat, hidden), "key / query hidden widths must match"
    assert wv.shape == (feat, feat), "value projection must map F -> F"
    w_all = jnp.concatenate([wq, wk, wv], axis=1)               # (F, 2H + F)
    b_all = jnp.concatenate([bq, bk, bv], axis=1)               # (1, 2H + F)
    return w_all, b_all, hidden


def period_fusion_attn(x, w_all, b_all, hidden):
    """x: (b, t, h_d, p) float32. w_all/b_all: packed [Wq|Wk|Wv] / [bq|bk|bv]."""
    b, t, h_d, p = x.shape
    feat = t * h_d

    # Free reshape (merges adjacent contiguous dims): (b, t, h_d, p) -> (b, F, p).
    # The logical (F,p)->(p,F) flip is folded into the in-kernel dot_general's
    # contraction, so no XLA transpose / extra HBM round-trip is needed.
    x2 = x.reshape(b, feat, p)

    kernel = functools.partial(_pfa_kernel, hidden=hidden)

    # Whole problem (~16 KiB) lives in VMEM: single invocation, no grid, no
    # double-buffering. TODO(synk): if an outer batch of problems appears,
    # regrid with dimension_semantics=("parallel",) to shard rows across the
    # two v7x TensorCores; at b=2 the fixed per-step cost exceeds the work.
    out = pl.pallas_call(
        kernel,
        out_shape=jax.ShapeDtypeStruct((b, feat), jnp.float32),
        in_specs=[
            pl.BlockSpec(memory_space=pltpu.MemorySpace.VMEM),   # x2
            pl.BlockSpec(memory_space=pltpu.MemorySpace.VMEM),   # [Wq|Wk|Wv]
            pl.BlockSpec(memory_space=pltpu.MemorySpace.VMEM),   # [bq|bk|bv]
        ],
        out_specs=pl.BlockSpec(memory_space=pltpu.MemorySpace.VMEM),
    )(x2, w_all, b_all)

    # (b, F) -> (b, t, h_d)
    return out.reshape(b, t, h_d)


def _reference(x, wq, bq, wk, bk, wv, bv):
    """Pure-JAX reference mirroring the PyTorch forward."""
    b, t, h_d, p = x.shape
    x_flat = jnp.transpose(x, (0, 3, 1, 2)).reshape(b, p, t * h_d)
    q = x_flat @ wq + bq
    k = x_flat @ wk + bk
    v = x_flat @ wv + bv
    s = jnp.einsum("bph,bqh->bpq", q, k)
    attn = jax.nn.softmax(s, axis=-1)
    fused = jnp.einsum("bpq,bqf->bpf", attn, v)
    return jnp.mean(fused, axis=1).reshape(b, t, h_d)


if __name__ == "__main__":
    # Small shapes consistent with the module: in_features = t * h_d
    b, t, h_d, p = 2, 8, 4, 16
    feat = t * h_d          # in_features = 32
    hidden = 32             # hidden_features

    key = jax.random.PRNGKey(0)
    kx, kq, kbq, kk, kbk, kv, kbv = jax.random.split(key, 7)

    x = jax.random.normal(kx, (b, t, h_d, p), dtype=jnp.float32)

    # Deterministic parameter init (stored as (in, out) for direct matmul)
    scale = 0.1
    wq = scale * jax.random.normal(kq, (feat, hidden), dtype=jnp.float32)
    bq = scale * jax.random.normal(kbq, (1, hidden), dtype=jnp.float32)
    wk = scale * jax.random.normal(kk, (feat, hidden), dtype=jnp.float32)
    bk = scale * jax.random.normal(kbk, (1, hidden), dtype=jnp.float32)
    wv = scale * jax.random.normal(kv, (feat, feat), dtype=jnp.float32)
    bv = scale * jax.random.normal(kbv, (1, feat), dtype=jnp.float32)

    # Parameter packing happens once, off the per-call path.
    w_all, b_all, hidden = pack_params(wq, bq, wk, bk, wv, bv)

    out = period_fusion_attn(x, w_all, b_all, hidden)
    out = jax.block_until_ready(out)

    ref = _reference(x, wq, bq, wk, bk, wv, bv)
    assert out.shape == (b, t, h_d)
    assert jnp.allclose(out, ref, atol=1e-5, rtol=1e-5), "mismatch vs JAX reference"

    print("KERNEL_OK")
</pallas_src>

<mosaic_0001>
module attributes {stable_mosaic.version = 11 : i64} {
  func.func @_pfa_kernel(%arg0: memref<2x32x16xf32, #tpu.memory_space<vmem>>, %arg1: memref<32x96xf32, #tpu.memory_space<vmem>>, %arg2: memref<1x96xf32, #tpu.memory_space<vmem>>, %arg3: memref<2x32xf32, #tpu.memory_space<vmem>>) attributes {dimension_semantics = [], scalar_prefetch = 0 : i64, scratch_operands = 0 : i64, tpu.core_type = #tpu.core_type<tc>} {
    %c0 = arith.constant 0 : index
    %c0_0 = arith.constant 0 : index
    %c0_1 = arith.constant 0 : index
    %0 = vector.load %arg0[%c0, %c0_0, %c0_1] : memref<2x32x16xf32, #tpu.memory_space<vmem>>, vector<2x32x16xf32>
    %c0_2 = arith.constant 0 : index
    %c0_3 = arith.constant 0 : index
    %1 = vector.load %arg1[%c0_2, %c0_3] : memref<32x96xf32, #tpu.memory_space<vmem>>, vector<32x96xf32>
    %cst = arith.constant dense<0.000000e+00> : vector<2x16x96xf32>
    %2 = tpu.matmul %0, %1, %cst {dimension_numbers = #tpu.dot_dimension_numbers<[1], [0], [0, 2], [1], [0, 0, 0, 2, 1, 1], [], []>} : vector<2x32x16xf32>, vector<32x96xf32>, vector<2x16x96xf32> -> vector<2x16x96xf32>
    %c0_4 = arith.constant 0 : index
    %c0_5 = arith.constant 0 : index
    %3 = vector.load %arg2[%c0_4, %c0_5] : memref<1x96xf32, #tpu.memory_space<vmem>>, vector<1x96xf32>
    %4 = vector.shape_cast %3 : vector<1x96xf32> to vector<1x1x96xf32>
    %5 = vector.broadcast %4 : vector<1x1x96xf32> to vector<2x16x96xf32>
    %6 = arith.addf %2, %5 : vector<2x16x96xf32>
    %7 = vector.extract_strided_slice %6 {offsets = [0, 0, 0], sizes = [2, 16, 32], strides = [1, 1, 1]} : vector<2x16x96xf32> to vector<2x16x32xf32>
    %8 = vector.extract_strided_slice %6 {offsets = [0, 0, 32], sizes = [2, 16, 32], strides = [1, 1, 1]} : vector<2x16x96xf32> to vector<2x16x32xf32>
    %9 = vector.extract_strided_slice %6 {offsets = [0, 0, 64], sizes = [2, 16, 32], strides = [1, 1, 1]} : vector<2x16x96xf32> to vector<2x16x32xf32>
    %cst_6 = arith.constant dense<0.000000e+00> : vector<2x16x16xf32>
    %10 = tpu.matmul %7, %8, %cst_6 {dimension_numbers = #tpu.dot_dimension_numbers<[2], [2], [1], [1], [0, 0, 0, 1, 1, 1], [0], [0]>} : vector<2x16x32xf32>, vector<2x16x32xf32>, vector<2x16x16xf32> -> vector<2x16x16xf32>
    %cst_7 = arith.constant dense<0xFF800000> : vector<2x16xf32>
    %11 = vector.multi_reduction <maximumf>, %10, %cst_7 [2] : vector<2x16x16xf32> to vector<2x16xf32>
    %12 = vector.shape_cast %11 : vector<2x16xf32> to vector<2x16x1xf32>
    %13 = vector.broadcast %12 : vector<2x16x1xf32> to vector<2x16x16xf32>
    %14 = arith.subf %10, %13 : vector<2x16x16xf32>
    %15 = math.exp %14 : vector<2x16x16xf32>
    %cst_8 = arith.constant dense<0.000000e+00> : vector<2x16xf32>
    %16 = vector.multi_reduction <add>, %15, %cst_8 [2] : vector<2x16x16xf32> to vector<2x16xf32>
    %17 = vector.shape_cast %16 : vector<2x16xf32> to vector<2x16x1xf32>
    %18 = tpu.reciprocal %17 {approx = true} : vector<2x16x1xf32> -> vector<2x16x1xf32>
    %19 = arith.mulf %17, %18 : vector<2x16x1xf32>
    %cst_9 = arith.constant 2.000000e+00 : f32
    %20 = vector.broadcast %cst_9 : f32 to vector<2x16x1xf32>
    %21 = arith.subf %20, %19 : vector<2x16x1xf32>
    %22 = arith.mulf %18, %21 : vector<2x16x1xf32>
    %23 = vector.broadcast %22 : vector<2x16x1xf32> to vector<2x16x16xf32>
    %24 = arith.mulf %15, %23 : vector<2x16x16xf32>
    %cst_10 = arith.constant dense<0.000000e+00> : vector<2x16xf32>
    %25 = vector.multi_reduction <add>, %24, %cst_10 [1] : vector<2x16x16xf32> to vector<2x16xf32>
    %26 = vector.shape_cast %25 : vector<2x16xf32> to vector<2x1x16xf32>
    %cst_11 = arith.constant 1.600000e+01 : f32
    %27 = vector.broadcast %cst_11 : f32 to vector<2x1x16xf32>
    %28 = arith.divf %26, %27 : vector<2x1x16xf32>
    %cst_12 = arith.constant dense<0.000000e+00> : vector<2x1x32xf32>
    %29 = tpu.matmul %28, %9, %cst_12 {dimension_numbers = #tpu.dot_dimension_numbers<[2], [1], [1], [2], [0, 0, 0, 1, 1, 2], [0], [0]>} : vector<2x1x16xf32>, vector<2x16x32xf32>, vector<2x1x32xf32> -> vector<2x1x32xf32>
    %30 = vector.shape_cast %29 : vector<2x1x32xf32> to vector<2x32xf32>
    %c0_13 = arith.constant 0 : index
    %c0_14 = arith.constant 0 : index
    %31 = vector.load %arg3[%c0_13, %c0_14] : memref<2x32xf32, #tpu.memory_space<vmem>>, vector<2x32xf32>
    tpu.vector_store %arg3[%c0_13, %c0_14], %30 {strides = array<i32>} : memref<2x32xf32, #tpu.memory_space<vmem>>, vector<2x32xf32>,
    return
  }
}

</mosaic_0001>

<bundles_post_ra>
// kernel: tpu_custom_call.1
= control target key start
LH: loop header
LB: loop body
LE: loop exit
PB: predicated region body
PF: predicated region fallthrough
CT: control target
= control target key end

     0   :  { %s559_s0 = inlined_call_operand.vmem [shape: f32[2,32,16], index: 0, kind: input, shape index: {}]   ;;  %s560_s1 = inlined_call_operand.vmem [shape: f32[32,96], index: 1, kind: input, shape index: {}]   ;;  %s561_s2 = inlined_call_operand.vmem [shape: f32[1,96], index: 2, kind: input, shape index: {}]   ;;  %s562_s3 = inlined_call_operand.hbm [shape: f32[2,32], index: 3, kind: output, shape index: {}]  }
   0x1   :  { %v15_v0 = vld [vmem:[%s559_s0] sm:$0xff]  ;;  %v26_v2 = vld [vmem:[%s560_s1 + $0x18] sm:$0xff]  ;;  %v25_v3 = vld [vmem:[%s560_s1 + $0x10] sm:$0xff] }
   0x2   :  { %v19_v1 = vld [vmem:[%s559_s0 + $0x20] sm:$0xff]  ;;  %31 = vxpose.xlu0.b32.start [1/4] (short) (narrow) %v15_v0, 16  ;;  %120 = vmatpush.msra.mxu0 %v26_v2  ;;  %v24_v4 = vld [vmem:[%s560_s1 + $0x8] sm:$0xff] }
   0x3   :  { %63 = vxpose.xlu1.b32.start [1/4] (short) (narrow) %v19_v1, 16  ;;  %391 = vmatpush.msra.mxu3 %v26_v2 }
   0x4   :  { %8 = vsyncpa [#allocation3], 0  ;;  %121 = vmatpush.msra.mxu0 %v25_v3  ;;  %v16_v5 = vld [vmem:[%s559_s0 + $0x8] sm:$0xff]  ;;  %v23_v7 = vld [vmem:[%s560_s1] sm:$0xff]  ;;  %vm95_vm0 = vcmask 261120   ;;  %vm211_vm1 = vcmask 130048  }
   0x5   :  { %392 = vmatpush.msra.mxu3 %v25_v3  ;;  %v20_v6 = vld [vmem:[%s559_s0 + $0x28] sm:$0xff]  ;;  %v17_v8 = vld [vmem:[%s559_s0 + $0x10] sm:$0xff]  ;;  %v18_v10 = vld [vmem:[%s559_s0 + $0x18] sm:$0xff]  ;;  %v457_v63 = vmov 16.0   ;;  %s458_s10 = smov [#allocation2]   ;;  %s368_s14 = sshll.u32 %s562_s3, 4  ;;  %s369_s14 = int_to_ptr.hbm [resolvable:$true] %s368_s14 }
   0x6   :  { %122 = vmatpush.msra.mxu0 %v24_v4  ;;  %v21_v9 = vld [vmem:[%s559_s0 + $0x30] sm:$0xff]  ;;  %v22_v11 = vld [vmem:[%s559_s0 + $0x38] sm:$0xff]  ;;  %v410_v16 = vld [vmem:[%s561_s2] ss:$0 sm:$0xff]  ;;  %s455_s0 = smov 96   ;;  %s456_s2 = smov 64  }
   0x7   :  { %393 = vmatpush.msra.mxu3 %v24_v4  ;;  %s366_s11 = sshll.u32 %s458_s10, 4  ;;  %vm356_vm3 = vcmask 1041409   ;;  %vm359_vm4 = vcmask 254976   ;;  %s367_s11 = int_to_ptr.vmem [resolvable:$true] %s366_s11 }
   0x8   :  { %123 = vmatpush.msra.mxu0 %v23_v7 }
   0x9   :  { %394 = vmatpush.msra.mxu3 %v23_v7 }
   0xa   :  { %32 = vxpose.xlu0.b32.cont [2/4] (short) (narrow) %v16_v5, 16 }
   0xb   :  { %64 = vxpose.xlu1.b32.cont [2/4] (short) (narrow) %v20_v6, 16 }
  0x12   :  { %33 = vxpose.xlu0.b32.cont [3/4] (short) (narrow) %v17_v8, 16 }
  0x13   :  { %65 = vxpose.xlu1.b32.cont [3/4] (short) (narrow) %v21_v9, 16 }
  0x1a   :  { %34 = vxpose.xlu0.b32.end [4/4] (short) (narrow) %v18_v10, 16 }
  0x1b   :  { %66 = vxpose.xlu1.b32.end [4/4] (short) (narrow) %v22_v11, 16 }
  0xa6   :  { %v47_v12 = vpop.trf.xlu0 }
  0xa7   :  { %v79_v13 = vpop.trf.xlu1  ;;  %377 = vmatmul.msk.f32.vlgmr.msra.gmra.mxu0 %vm95_vm0, %v47_v12 }
  0xae   :  { %v48_v14 = vpop.trf.xlu0 }
  0xaf   :  { %v80_v15 = vpop.trf.xlu1  ;;  %378 = vmatmul.msk.f32.gmra.mxu0 %vm95_vm0, %v48_v14 }
  0xb0   :  { %380 = vmatmul.msk.f32.vlgmr.msra.gmra.mxu3 %vm95_vm0, %v80_v15 }
  0xb7   :  { %379 = vmatmul.msk.f32.gmra.mxu0 %vm95_vm0, %v79_v13 }
 0x124   :  { %v125_v17 = vpop.f32.mrf.mxu0 }
 0x125   :  { %v522_v18 = vadd.f32 %v410_v16, %v125_v17 }
 0x127   :  { %139 = vrot.lane.b32.xlu2 %v522_v18, %s455_s0 }
 0x12c   :  { %v128_v19 = vpop.f32.mrf.mxu0 }
 0x12d   :  { %v525_v20 = vadd.f32 %v410_v16, %v128_v19 }
 0x12f   :  { %141 = vrot.lane.b32.xlu2 %v525_v20, %s455_s0  ;;  %v400_v58 = vpack.i.bf16 %v522_v18, %v525_v20 }
 0x133   :  { %v134_v21 = vpop.f32.mrf.mxu3 }
 0x134   :  { %v135_v22 = vadd.f32 %v410_v16, %v134_v21  ;;  %v131_v23 = vpop.f32.mrf.mxu0 }
 0x135   :  { %v132_v24 = vadd.f32 %v410_v16, %v131_v23 }
 0x137   :  { %178 = vrot.lane.b32.xlu2 %v135_v22, %s455_s0  ;;  %v405_v37 = vpack.i.bf16 %v132_v24, %v135_v22 }
 0x13f   :  { %176 = vrot.lane.b32.xlu2 %v132_v24, %s455_s0 }
 0x181   :  { %v140_v25 = vpop.permute.xlu2 %139 }
 0x189   :  { %v142_v26 = vpop.permute.xlu2 %141 }
 0x18a   :  { %381 = vmatpush.xpose.msk.msra.mxu1 %vm95_vm0, %v142_v26 }
 0x18e   :  { %382 = vmatpush.xpose.msk.msra.mxu1 %vm95_vm0, %v140_v25 }
 0x191   :  { %383 = vmatmul.msk.f32.vlgmr.msra.gmra.mxu1 %vm95_vm0, %v522_v18  ;;  %v179_v27 = vpop.permute.xlu2 %178 }
 0x192   :  { %385 = vmatpush.xpose.msk.msra.mxu2 %vm95_vm0, %v179_v27 }
 0x199   :  { %384 = vmatmul.msk.f32.gmra.mxu1 %vm95_vm0, %v525_v20  ;;  %v177_v28 = vpop.permute.xlu2 %176 }
 0x19a   :  { %386 = vmatpush.xpose.msk.msra.mxu2 %vm95_vm0, %v177_v28 }
 0x19d   :  { %387 = vmatmul.msk.f32.vlgmr.msra.gmra.mxu2 %vm95_vm0, %v132_v24 }
 0x1a5   :  { %388 = vmatmul.msk.f32.gmra.mxu2 %vm95_vm0, %v135_v22 }
 0x20e   :  { %v168_v29 = vpop.f32.mrf.mxu1 }
 0x20f   :  { %v212_v30 = vsel %vm211_vm1, %v168_v29, -inf }
 0x210   :  { %213 = vmax.xlane.f32.xlu0 %v212_v30 }
 0x216   :  { %v171_v31 = vpop.f32.mrf.mxu1 }
 0x217   :  { %v215_v32 = vsel %vm211_vm1, %v171_v31, -inf }
 0x218   :  { %216 = vmax.xlane.f32.xlu1 %v215_v32 }
 0x220   :  { %v205_v33 = vpop.f32.mrf.mxu2 }
 0x221   :  { %v218_v34 = vsel %vm211_vm1, %v205_v33, -inf }
 0x222   :  { %219 = vmax.xlane.f32.xlu2 %v218_v34 }
 0x228   :  { %v208_v35 = vpop.f32.mrf.mxu2 }
 0x229   :  { %v221_v36 = vsel %vm211_vm1, %v208_v35, -inf }
 0x22a   :  { %222 = vmax.xlane.f32.xlu2 %v221_v36 }
 0x231   :  { %406 = vrot.lane.b32.xlu1 %v405_v37, %s456_s2 }
 0x283   :  { %v214_v38 = vpop.xlane.xlu0 %213 }
 0x284   :  { %v224_v39 = vsub.f32 %v168_v29, %v214_v38 }
 0x286   :  { %v228_v40 = vmul.f32 1.442695, %v224_v39 }
 0x288   :  { %411 = vpow2.f32 %v228_v40 }
 0x28b   :  { %v217_v41 = vpop.xlane.xlu1 %216 }
 0x28c   :  { %v225_v42 = vsub.f32 %v171_v31, %v217_v41 }
 0x28e   :  { %v412_v43 = vpop.eup %411  ;;  %v230_v44 = vmul.f32 1.442695, %v225_v42 }
 0x28f   :  { %v236_v45 = vsel %vm211_vm1, %v412_v43, 0.0 }
 0x290   :  { %413 = vpow2.f32 %v230_v44  ;;  %237 = vadd.xlane.f32.xlu2 %v236_v45 }
 0x295   :  { %v220_v46 = vpop.xlane.xlu2 %219 }
 0x296   :  { %v414_v47 = vpop.eup %413  ;;  %v226_v48 = vsub.f32 %v205_v33, %v220_v46 }
 0x297   :  { %v239_v49 = vsel %vm211_vm1, %v414_v47, 0.0 }
 0x298   :  { %v232_v50 = vmul.f32 1.442695, %v226_v48  ;;  %240 = vadd.xlane.f32.xlu2 %v239_v49 }
 0x29a   :  { %415 = vpow2.f32 %v232_v50 }
 0x29d   :  { %v223_v51 = vpop.xlane.xlu2 %222 }
 0x29e   :  { %v227_v52 = vsub.f32 %v208_v35, %v223_v51 }
 0x2a0   :  { %v416_v53 = vpop.eup %415  ;;  %v234_v54 = vmul.f32 1.442695, %v227_v52 }
 0x2a1   :  { %v242_v55 = vsel %vm211_vm1, %v416_v53, 0.0 }
 0x2a2   :  { %417 = vpow2.f32 %v234_v54  ;;  %243 = vadd.xlane.f32.xlu2 %v242_v55 }
 0x2a3   :  { %v407_v29 = vpop.permute.xlu1 %406 }
 0x2a4   :  { %v408_v36 = vunpack.i.l.bf16 %v407_v29  ;;  %v409_v40 = vunpack.i.h.bf16 %v407_v29 }
 0x2a8   :  { %v418_v56 = vpop.eup %417 }
 0x2a9   :  { %v245_v57 = vsel %vm211_vm1, %v418_v56, 0.0 }
 0x2aa   :  { %246 = vadd.xlane.f32.xlu2 %v245_v57 }
 0x2c2   :  { %401 = vrot.lane.b32.xlu2 %v400_v58, %s456_s2 }
 0x303   :  { %v238_v59 = vpop.xlane.xlu2 %237 }
 0x304   :  { %419 = vrcp.f32 %v238_v59 }
 0x30a   :  { %v420_v60 = vpop.eup %419 }
 0x30b   :  { %v252_v61 = vmul.f32 %v420_v60, %v238_v59  ;;  %v241_v62 = vpop.xlane.xlu2 %240 }
 0x30c   :  { %421 = vrcp.f32 %v241_v62 }
 0x30d   :  { %423 = vrcp.f32 %v457_v63  ;;  %v256_v0 = vsub.f32 2.0, %v252_v61 }
 0x30f   :  { %v260_v2 = vmul.f32 %v420_v60, %v256_v0 }
 0x311   :  { %v264_v7 = vmul.f32 %v412_v43, %v260_v2 }
 0x312   :  { %v422_v1 = vpop.eup %421 }
 0x313   :  { %v253_v3 = vmul.f32 %v422_v1, %v241_v62  ;;  %v424_v4 = vpop.eup %423  ;;  %v268_v11 = vsel %vm211_vm1, %v264_v7, 0.0 }
 0x314   :  { %v287_v9 = vmul.f32 16.0, %v424_v4  ;;  %vm291_vm2 = vweird.f32 %v424_v4 }
 0x315   :  { %v257_v5 = vsub.f32 2.0, %v253_v3  ;;  %v244_v6 = vpop.xlane.xlu2 %243 }
 0x316   :  { %425 = vrcp.f32 %v244_v6  ;;  %v288_v13 = vsub.f32 1.0, %v287_v9 }
 0x317   :  { %v261_v8 = vmul.f32 %v422_v1, %v257_v5 }
 0x318   :  { %v289_v19 = vmul.f32 %v424_v4, %v288_v13 }
 0x319   :  { %v265_v10 = vmul.f32 %v414_v47, %v261_v8 }
 0x31a   :  { %v290_v23 = vadd.f32 %v424_v4, %v289_v19 }
 0x31b   :  { %v269_v12 = vsel %vm211_vm1, %v265_v10, 0.0 }
 0x31c   :  { %v426_v14 = vpop.eup %425  ;;  %v270_v15 = vadd.f32 %v269_v12, %v268_v11  ;;  %v292_v33 = vsel %vm291_vm2, %v424_v4, %v290_v23 }
 0x31d   :  { %v254_v16 = vmul.f32 %v426_v14, %v244_v6  ;;  %v247_v17 = vpop.xlane.xlu2 %246 }
 0x31e   :  { %v271_v18 = vrot.slane %v270_v15, 4  ;;  %427 = vrcp.f32 %v247_v17 }
 0x31f   :  { %v258_v21 = vsub.f32 2.0, %v254_v16 }
 0x320   :  { %v272_v20 = vadd.f32 %v271_v18, %v270_v15 }
 0x321   :  { %v262_v26 = vmul.f32 %v426_v14, %v258_v21 }
 0x322   :  { %v273_v22 = vrot.slane %v272_v20, 2 }
 0x323   :  { %v266_v37 = vmul.f32 %v416_v53, %v262_v26 }
 0x324   :  { %v428_v24 = vpop.eup %427  ;;  %v274_v25 = vadd.f32 %v273_v22, %v272_v20 }
 0x325   :  { %v255_v27 = vmul.f32 %v428_v24, %v247_v17  ;;  %v402_v28 = vpop.permute.xlu2 %401  ;;  %v277_v42 = vsel %vm211_vm1, %v266_v37, 0.0 }
 0x326   :  { %v403_v30 = vunpack.i.l.bf16 %v402_v28  ;;  %v275_v31 = vrot.slane %v274_v25, 1  ;;  %v404_v34 = vunpack.i.h.bf16 %v402_v28 }
 0x327   :  { %v259_v32 = vsub.f32 2.0, %v255_v27 }
 0x328   :  { %318 = vmatpush.msrb.mxu3 %v403_v30  ;;  %v276_v35 = vadd.f32 %v275_v31, %v274_v25 }
 0x329   :  { %v263_v38 = vmul.f32 %v428_v24, %v259_v32 }
 0x32a   :  { %319 = vmatpush.msrb.mxu3 %v404_v34  ;;  %v293_v39 = vmul.f32 %v292_v33, %v276_v35 }
 0x32b   :  { %v267_v41 = vmul.f32 %v418_v56, %v263_v38 }
 0x32c   :  { %347 = vmatpush.msra.mxu3 %v408_v36 }
 0x32d   :  { %389 = vmatmul.msk.f32.vlgmr.msrb.gmra.mxu3 %vm211_vm1, %v293_v39  ;;  %v278_v43 = vsel %vm211_vm1, %v267_v41, 0.0 }
 0x32e   :  { %348 = vmatpush.msra.mxu3 %v409_v40  ;;  %v279_v44 = vadd.f32 %v278_v43, %v277_v42 }
 0x330   :  { %v280_v45 = vrot.slane %v279_v44, 4 }
 0x332   :  { %v281_v46 = vadd.f32 %v280_v45, %v279_v44 }
 0x334   :  { %v282_v47 = vrot.slane %v281_v46, 2 }
 0x336   :  { %v283_v48 = vadd.f32 %v282_v47, %v281_v46 }
 0x338   :  { %v284_v49 = vrot.slane %v283_v48, 1 }
 0x33a   :  { %v285_v50 = vadd.f32 %v284_v49, %v283_v48 }
 0x33c   :  { %v294_v51 = vmul.f32 %v292_v33, %v285_v50 }
 0x33e   :  { %390 = vmatmul.msk.f32.vlgmr.msra.gmra.mxu3 %vm211_vm1, %v294_v51 }
 0x3b0   :  { %v321_v52 = vpop.f32.mrf.mxu3 }
 0x3c1   :  { %v350_v53 = vpop.f32.mrf.mxu3 }
 0x3c2   :  { %v355_v54 = vrot.slane %v350_v53, 7 }
 0x3c4   :  { %v357_v55 = vsel %vm356_vm3, %v355_v54, %v321_v52 }
 0x3c5   :  { %360 = vst.msk [vmem:[#allocation2] sm:$0x3] %vm359_vm4, %v357_v55 }
 0x3c6   :  { %371 = dma.vmem_to_hbm [thread:$0]  %s367_s11, 32, %s369_s14, [#allocation3]  }
 0x3c7   :  { %453 = dma.done.wait [#allocation3], 32  }
 0x3c8   :  { %454 = vsyncadd [#allocation3], 4294967264 }
 0x3c9   :  { %376 = vsyncpa [#allocation3], 1 }

</bundles_post_ra>
